<compile_context>
chip_gen: v5e
topology: v5e:2x2
jax: 0.10.0
libtpu: 0.0.40
codegen_flags: <defaults>
</compile_context>

<pallas_src>
import functools

import jax
import jax.numpy as jnp
from jax.experimental import pallas as pl
from jax.experimental.pallas import tpu as pltpu


def _round_up(x, m):
    return ((x + m - 1) // m) * m


@functools.lru_cache(maxsize=1)
def _vmem_budget_bytes():
    """Per-generation VMEM budget (~3/4 of physical VMEM)."""
    cap = 64 * 1024 * 1024  # conservative fallback (v7x-sized)
    try:
        cap = int(pltpu.get_tpu_info().vmem_capacity_bytes)
    except Exception:
        pass
    return (cap * 3) // 4  # ~48 MiB on v7x, ~96 MiB on v5e/v6e


def _fused_kernel(x_ref, w_ref, b_ref, res_ref, o_ref):
    """o = x @ w + bias + residual, with K untiled (fully parallel 2-D grid)."""
    acc = jnp.dot(x_ref[...], w_ref[...], preferred_element_type=jnp.float32)
    acc += b_ref[...].astype(jnp.float32)
    acc += res_ref[...].astype(jnp.float32)
    o_ref[...] = acc.astype(o_ref.dtype)


def _fused_kernel_ksplit(x_ref, w_ref, b_ref, res_ref, o_ref, acc_ref):
    """Same op with a K-reduction grid axis (innermost, 'arbitrary')."""
    k = pl.program_id(2)

    @pl.when(k == 0)
    def _():
        # Seed the accumulator with the broadcast bias -> finalize is acc + res.
        acc_ref[...] = jnp.broadcast_to(
            b_ref[...].astype(jnp.float32), acc_ref.shape)

    acc_ref[...] += jnp.dot(
        x_ref[...], w_ref[...], preferred_element_type=jnp.float32)

    @pl.when(k == pl.num_programs(2) - 1)
    def _():
        o_ref[...] = (acc_ref[...]
                      + res_ref[...].astype(jnp.float32)).astype(o_ref.dtype)


@jax.jit
def vitmae_output(hidden_states, weight_t, bias, input_tensor):
    """hidden_states: (B,S,K); weight_t: (K,N) == torch weight.T; bias: (N,);
    input_tensor: (B,S,N).  Returns (B,S,N)."""
    B, S, K = hidden_states.shape
    N = weight_t.shape[1]
    M = B * S

    x = hidden_states.reshape(M, K)
    res = input_tensor.reshape(M, N)
    b2d = bias.reshape(1, N)
    out_dtype = hidden_states.dtype

    xb = jnp.dtype(hidden_states.dtype).itemsize
    wb = jnp.dtype(weight_t.dtype).itemsize
    bb = jnp.dtype(bias.dtype).itemsize
    rb = jnp.dtype(input_tensor.dtype).itemsize
    ob = jnp.dtype(out_dtype).itemsize

    budget = _vmem_budget_bytes()

    # Double-buffered VMEM footprints (conservative: W counted 2x even when
    # its block index is constant and it is fetched only once).
    def fp2d(tm, tn):
        return (2 * tm * K * xb + 2 * K * tn * wb + 2 * 8 * tn * bb
                + 2 * tm * tn * (rb + ob))

    def fp3d(tm, tn, tk):
        return (2 * tm * tk * xb + 2 * tk * tn * wb + 2 * 8 * tn * bb
                + 2 * tm * tn * (rb + ob) + tm * tn * 4)

    # M-tile cap: guarantee >= 2 M tiles (when possible) so a dual-TC chip
    # (v7x) keeps both cores busy; negligible cost on 1-TC chips since the
    # resident weight is not re-fetched.
    if M <= 8:
        tm_cap = _round_up(max(M, 1), 8)
    else:
        tm_cap = _round_up(pl.cdiv(M, 2), 8)

    tm_eff = None
    tn_eff = None
    tk_eff = None

    # Preferred: full-N (weight-resident) layout, biggest tm that fits.
    for tm_c in (512, 384, 256, 128, 64, 32, 16, 8):
        tm_c = min(tm_c, tm_cap)
        if fp2d(tm_c, N) <= budget:
            tm_eff, tn_eff = tm_c, N
            break

    if tn_eff is None:
        # Weight panel too large for full-N residency: tile N (multiple of 128,
        # lane-dense stores) and order the grid (N outer, M inner) so the
        # K x tn weight panel stays resident per outer step and only x is
        # re-streamed N_tiles times.
        for tn_c in (512, 256, 128):
            if tn_c >= N:
                continue
            for tm_c in (512, 256, 128, 64, 32, 16, 8):
                tm_c = min(tm_c, tm_cap)
                if fp2d(tm_c, tn_c) <= budget:
                    tm_eff, tn_eff = tm_c, tn_c
                    break
            if tn_eff is not None:
                break

    if tn_eff is None:
        # Huge-K fallback: split K.  K must be zero-padded here -- garbage in a
        # ragged K tail would corrupt the accumulator (unlike ragged M/N, whose
        # garbage only reaches discarded output regions).
        tm_eff = min(256, tm_cap)
        tn_eff = N if N <= 256 else 256
        tk_eff = min(_round_up(K, 128), 4096)
        while tk_eff > 128 and fp3d(tm_eff, tn_eff, tk_eff) > budget:
            tk_eff = _round_up(tk_eff // 2, 128)
        K_pad = _round_up(K, tk_eff)
        if K_pad != K:
            x = jnp.pad(x, ((0, 0), (0, K_pad - K)))
            weight_t = jnp.pad(weight_t, ((0, K_pad - K), (0, 0)))
    else:
        K_pad = K

    use_ksplit = tk_eff is not None

    nt = pl.cdiv(N, tn_eff)
    mt = pl.cdiv(M, tm_eff)

    cost = pl.CostEstimate(
        flops=2 * M * K * N,
        transcendentals=0,
        bytes_accessed=(M * K * xb + K * N * wb + N * bb
                        + M * N * rb + M * N * ob),
    )
    vmem_limit = int(min(budget, 100 * 1024 * 1024))

    if not use_ksplit:
        grid = (nt, mt)  # N outer (weight panel resident), M inner
        out = pl.pallas_call(
            _fused_kernel,
            out_shape=jax.ShapeDtypeStruct((M, N), out_dtype),
            grid_spec=pltpu.PrefetchScalarGridSpec(
                num_scalar_prefetch=0,
                grid=grid,
                in_specs=[
                    pl.BlockSpec((tm_eff, K), lambda j, i: (i, 0)),       # x
                    pl.BlockSpec((K, tn_eff), lambda j, i: (0, j)),       # W^T
                    pl.BlockSpec((1, tn_eff), lambda j, i: (0, j)),       # bias
                    pl.BlockSpec((tm_eff, tn_eff), lambda j, i: (i, j)),  # residual
                ],
                out_specs=pl.BlockSpec((tm_eff, tn_eff), lambda j, i: (i, j)),
            ),
            compiler_params=pltpu.CompilerParams(
                dimension_semantics=("parallel", "parallel"),
                vmem_limit_bytes=vmem_limit,
            ),
            cost_estimate=cost,
        )(x, weight_t, b2d, res)
    else:
        kt = K_pad // tk_eff
        grid = (nt, mt, kt)
        out = pl.pallas_call(
            _fused_kernel_ksplit,
            out_shape=jax.ShapeDtypeStruct((M, N), out_dtype),
            grid_spec=pltpu.PrefetchScalarGridSpec(
                num_scalar_prefetch=0,
                grid=grid,
                in_specs=[
                    pl.BlockSpec((tm_eff, tk_eff), lambda j, i, k: (i, k)),   # x
                    pl.BlockSpec((tk_eff, tn_eff), lambda j, i, k: (k, j)),   # W^T
                    pl.BlockSpec((1, tn_eff), lambda j, i, k: (0, j)),        # bias
                    pl.BlockSpec((tm_eff, tn_eff), lambda j, i, k: (i, j)),   # residual
                ],
                out_specs=pl.BlockSpec((tm_eff, tn_eff), lambda j, i, k: (i, j)),
                scratch_shapes=[pltpu.VMEM((tm_eff, tn_eff), jnp.float32)],
            ),
            compiler_params=pltpu.CompilerParams(
                dimension_semantics=("parallel", "parallel", "arbitrary"),
                vmem_limit_bytes=vmem_limit,
            ),
            cost_estimate=cost,
        )(x, weight_t, b2d, res)

    return out.reshape(B, S, N)


# TODO(synk): training-mode dropout (pltpu.prng_seed/prng_random_bits) is not
# implemented; eval-mode (dropout == identity) semantics are assumed.


if __name__ == "__main__":
    # Small config consistent with the module: hidden_size=32, intermediate_size=128.
    B, S = 2, 8
    hidden_size = 32
    intermediate_size = 128

    key = jax.random.PRNGKey(0)
    k_x, k_res, k_w, k_b = jax.random.split(key, 4)

    hidden_states = jax.random.normal(k_x, (B, S, intermediate_size), jnp.float32)
    input_tensor = jax.random.normal(k_res, (B, S, hidden_size), jnp.float32)

    # nn.Linear(intermediate_size, hidden_size): PyTorch weight is (N, K);
    # we pass its transpose (K, N).
    weight = (jax.random.normal(k_w, (hidden_size, intermediate_size), jnp.float32)
              / jnp.sqrt(float(intermediate_size)))
    bias = jax.random.normal(k_b, (hidden_size,), jnp.float32) * 0.02

    out = jax.block_until_ready(
        vitmae_output(hidden_states, weight.T, bias, input_tensor))
    ref = (jnp.einsum("bsk,nk->bsn", hidden_states, weight,
                      precision=jax.lax.Precision.HIGHEST)
           + bias + input_tensor)
    assert out.shape == (B, S, hidden_size)
    assert jnp.allclose(out, ref, atol=1e-2, rtol=1e-2), \
        float(jnp.max(jnp.abs(out - ref)))

    # Second check: ragged M (B*S = 394 not a multiple of the row tile),
    # exercising the masked edge block and the weight-resident layout.
    B2, S2, H2, I2 = 2, 197, 256, 1024
    k_x2, k_res2, k_w2, k_b2 = jax.random.split(jax.random.PRNGKey(1), 4)
    hs2 = jax.random.normal(k_x2, (B2, S2, I2), jnp.float32)
    res2 = jax.random.normal(k_res2, (B2, S2, H2), jnp.float32)
    w2 = jax.random.normal(k_w2, (H2, I2), jnp.float32) / jnp.sqrt(float(I2))
    b2 = jax.random.normal(k_b2, (H2,), jnp.float32) * 0.02

    out2 = jax.block_until_ready(vitmae_output(hs2, w2.T, b2, res2))
    ref2 = (jnp.einsum("bsk,nk->bsn", hs2, w2,
                       precision=jax.lax.Precision.HIGHEST) + b2 + res2)
    assert out2.shape == (B2, S2, H2)
    assert jnp.allclose(out2, ref2, atol=2e-2, rtol=2e-2), \
        float(jnp.max(jnp.abs(out2 - ref2)))

    print("KERNEL_OK")
</pallas_src>

<mosaic_0001>
module attributes {stable_mosaic.version = 11 : i64} {
  func.func @_fused_kernel(%arg0: i32, %arg1: i32, %arg2: memref<8x128xf32, #tpu.memory_space<vmem>>, %arg3: memref<128x32xf32, #tpu.memory_space<vmem>>, %arg4: memref<1x32xf32, #tpu.memory_space<vmem>>, %arg5: memref<8x32xf32, #tpu.memory_space<vmem>>, %arg6: memref<8x32xf32, #tpu.memory_space<vmem>>) attributes {dimension_semantics = [#tpu.dimension_semantics<parallel>, #tpu.dimension_semantics<parallel>], iteration_bounds = array<i64: 1, 2>, scalar_prefetch = 0 : i64, scratch_operands = 0 : i64, tpu.core_type = #tpu.core_type<tc>, window_params = [{transform_indices = @transform_0, window_bounds = array<i64: 8, 128>}, {transform_indices = @transform_1, window_bounds = array<i64: 128, 32>}, {transform_indices = @transform_2, window_bounds = array<i64: 1, 32>}, {transform_indices = @transform_3, window_bounds = array<i64: 8, 32>}, {transform_indices = @transform_4, window_bounds = array<i64: 8, 32>}]} {
    %c0 = arith.constant 0 : index
    %c0_0 = arith.constant 0 : index
    %0 = vector.load %arg2[%c0, %c0_0] : memref<8x128xf32, #tpu.memory_space<vmem>>, vector<8x128xf32>
    %c0_1 = arith.constant 0 : index
    %c0_2 = arith.constant 0 : index
    %1 = vector.load %arg3[%c0_1, %c0_2] : memref<128x32xf32, #tpu.memory_space<vmem>>, vector<128x32xf32>
    %cst = arith.constant dense<0.000000e+00> : vector<8x32xf32>
    %2 = tpu.matmul %0, %1, %cst {dimension_numbers = #tpu.dot_dimension_numbers<[1], [0], [0], [1], [0, 0, 1, 1], [], []>} : vector<8x128xf32>, vector<128x32xf32>, vector<8x32xf32> -> vector<8x32xf32>
    %c0_3 = arith.constant 0 : index
    %c0_4 = arith.constant 0 : index
    %3 = vector.load %arg4[%c0_3, %c0_4] : memref<1x32xf32, #tpu.memory_space<vmem>>, vector<1x32xf32>
    %4 = vector.broadcast %3 : vector<1x32xf32> to vector<8x32xf32>
    %5 = arith.addf %2, %4 : vector<8x32xf32>
    %c0_5 = arith.constant 0 : index
    %c0_6 = arith.constant 0 : index
    %6 = vector.load %arg5[%c0_5, %c0_6] : memref<8x32xf32, #tpu.memory_space<vmem>>, vector<8x32xf32>
    %7 = arith.addf %5, %6 : vector<8x32xf32>
    %c0_7 = arith.constant 0 : index
    %c0_8 = arith.constant 0 : index
    %8 = vector.load %arg6[%c0_7, %c0_8] : memref<8x32xf32, #tpu.memory_space<vmem>>, vector<8x32xf32>
    tpu.vector_store %arg6[%c0_7, %c0_8], %7 {strides = array<i32>} : memref<8x32xf32, #tpu.memory_space<vmem>>, vector<8x32xf32>,
    return
  }
  func.func @transform_0(%arg0: i32, %arg1: i32) -> (i32, i32) {
    %c0_i32 = arith.constant 0 : i32
    %c0_i32_0 = arith.constant 0 : i32
    return %arg1, %c0_i32 : i32, i32
  }
  func.func @transform_1(%arg0: i32, %arg1: i32) -> (i32, i32) {
    %c0_i32 = arith.constant 0 : i32
    %c0_i32_0 = arith.constant 0 : i32
    return %c0_i32, %arg0 : i32, i32
  }
  func.func @transform_2(%arg0: i32, %arg1: i32) -> (i32, i32) {
    %c0_i32 = arith.constant 0 : i32
    %c0_i32_0 = arith.constant 0 : i32
    return %c0_i32, %arg0 : i32, i32
  }
  func.func @transform_3(%arg0: i32, %arg1: i32) -> (i32, i32) {
    %c0_i32 = arith.constant 0 : i32
    return %arg1, %arg0 : i32, i32
  }
  func.func @transform_4(%arg0: i32, %arg1: i32) -> (i32, i32) {
    %c0_i32 = arith.constant 0 : i32
    return %arg1, %arg0 : i32, i32
  }
}

</mosaic_0001>

<bundles_post_ra>
// kernel: vitmae_output.1
= control target key start
LH: loop header
LB: loop body
LE: loop exit
PB: predicated region body
PF: predicated region fallthrough
CT: control target
= control target key end

     0   :  { %9 = vsyncpa [#allocation3], 0  ;;  %s764_s0 = inlined_call_operand.vmem [shape: f32[16,128], index: 0, kind: input, shape index: {}]   ;;  %s765_s1 = inlined_call_operand.vmem [shape: f32[128,32], index: 1, kind: input, shape index: {}]   ;;  %s766_s2 = inlined_call_operand.vmem [shape: f32[1,32], index: 2, kind: input, shape index: {}]   ;;  %s767_s3 = inlined_call_operand.vmem [shape: f32[16,32], index: 3, kind: input, shape index: {}]   ;;  %s768_s4 = inlined_call_operand.hbm [shape: f32[16,32], index: 4, kind: output, shape index: {}]  }
   0x1   :  { %11 = vsyncpa [#allocation3 + $0x1], 0  ;;  %s613_s15 = smov 0   ;;  %s615_s16 = smov 0  }
   0x2   :  { %s617_s17 = smov 0   ;;  %s619_s18 = smov 0  }
   0x3   :  { %s621_s19 = smov 0   ;;  %s623_s20 = smov 0  }
   0x4 LB: > { %s438_s21 = sadd.s32 4294967295, %s586_s20   ;;  %s439_s22 = sadd.s32 4294967294, %s586_s20   ;;  %s586_s20 = sphi %s623_s20, %s17_s20   ;;  %s582_s19 = sphi %s621_s19, %s775_s19   ;;  %s578_s18 = sphi %s619_s18, %s774_s18   ;;  %s574_s17 = sphi %s617_s17, %s773_s17   ;;  %s570_s16 = sphi %s615_s16, %s772_s16   ;;  %s566_s15 = sphi %s613_s15, %s771_s15  }
   0x5   : > { %s26_s23 = sadd.s32 1, %s582_s19  ;;  %s144_s24 = sadd.s32 1, %s574_s17 }
   0x6   : > { %p27_p0 = scmp.ge.s32.totalorder %s26_s23, 2  ;;  %p154_p1 = scmp.ne.s32.totalorder %s574_s17, %s570_s16 }
   0x7   : > { %p155_p2 = scmp.eq.s32.totalorder %s438_s21, 1  ;;  %p160_p3 = scmp.ne.s32.totalorder %s570_s16, %s566_s15 }
   0x8   : > { %s777_s23 = smov (%p27_p0, %s26_s23), 0  ;;  %p161_p5 = scmp.eq.s32.totalorder %s439_s22, 1 }
   0x9   : > { %p653_p4 = por %p155_p2, %p154_p1  ;;  %s139_s26 = ssub.s32 %s582_s19, %s777_s23 }
   0xa   : > { %p444_p6 = scmp.ge.s32.totalorder %s586_s20, 1  ;;  %p142_p7 = scmp.eq.s32.totalorder %s139_s26, 0 }
   0xb   : > { %p660_p8 = por %p161_p5, %p160_p3  ;;  %p209_p9 = scmp.lt.s32.totalorder %s586_s20, 3 }
   0xc   : > { %s666_s28 = scalar_select %p142_p7, %s574_s17, %s144_s24  }
   0xd   : > { %p210_p10 = pnand %p444_p6, %p209_p9 }
   0xe   : > { %p248_p11 = scmp.lt.s32.totalorder (!%p210_p10), %s578_s18, 1  ;;  %s245_s8 = sand.u32 (!%p210_p10), 1, %s570_s16  }
   0xf   : > { %213 = sbr.rel (%p210_p10) target bundleno = 185 (0xb9), region = 36  ;;  %s449_s10 = sshll.u32 (!%p210_p10), %s578_s18, 3 }
  0x10   : > { %s323_s29 = scalar_lea.hbm (!%p210_p10), %s768_s4, %s449_s10 }
  0x11   : > { %s327_s6 = sshll.u32 (!%p210_p10), %s323_s29, 4  ;;  %s328_s6 = int_to_ptr.hbm [resolvable:$true] %s327_s6 }
  0x14   : > { %v282_v0 = vld [vmem:[%s765_s1 + $0x78] sm:$0xff]  ;;  %v281_v1 = vld [vmem:[%s765_s1 + $0x70] sm:$0xff]  ;;  %v280_v2 = vld [vmem:[%s765_s1 + $0x68] sm:$0xff]  ;;  %s249_s9 = scalar_select %p248_p11, %s578_s18, 1  ;;  %vm309_vm0 = vcmask 261120  }
  0x15   : > { %287 = vmatpush.msra.mxu0 %v282_v0  ;;  %v279_v3 = vld [vmem:[%s765_s1 + $0x60] sm:$0xff]  ;;  %v278_v4 = vld [vmem:[%s765_s1 + $0x58] sm:$0xff]  ;;  %v277_v5 = vld [vmem:[%s765_s1 + $0x50] sm:$0xff]  ;;  %s312_s18 = scalar_lea.sflag [#allocation3], %s245_s8 }
  0x16   : > { %v276_v6 = vld [vmem:[%s765_s1 + $0x48] sm:$0xff]  ;;  %v275_v7 = vld [vmem:[%s765_s1 + $0x40] sm:$0xff]  ;;  %v274_v8 = vld [vmem:[%s765_s1 + $0x38] sm:$0xff]  ;;  %s446_s14 = sshll.u32 %s249_s9, 3  ;;  %s445_s9 = sshll.u32 %s245_s8, 3 }
  0x17   : > { %288 = vmatpush.msra.mxu0 %v281_v1  ;;  %v273_v9 = vld [vmem:[%s765_s1 + $0x30] sm:$0xff]  ;;  %v272_v10 = vld [vmem:[%s765_s1 + $0x28] sm:$0xff]  ;;  %v271_v11 = vld [vmem:[%s765_s1 + $0x20] sm:$0xff]  ;;  %s251_s5 = scalar_lea.vmem %s764_s0, %s446_s14  ;;  %s265_s13 = scalar_lea.vmem %s767_s3, %s446_s14 }
  0x18   : > { %v270_v12 = vld [vmem:[%s765_s1 + $0x18] sm:$0xff]  ;;  %v269_v13 = vld [vmem:[%s765_s1 + $0x10] sm:$0xff]  ;;  %v268_v14 = vld [vmem:[%s765_s1 + $0x8] sm:$0xff]  ;;  %s247_s30 = scalar_lea.vmem [#allocation2], %s445_s9  ;;  %s522_s14 = sshra.s32 %s328_s6, 4  ;;  %s523_s14 = int_to_ptr.hbm [resolvable:$true] %s522_s14 }
  0x19   : > { %289 = vmatpush.msra.mxu0 %v280_v2  ;;  %v267_v15 = vld [vmem:[%s765_s1] sm:$0xff]  ;;  %s524_s7 = scalar_lea.hbm %s523_s14, 8  ;;  %s528_s9 = scalar_lea.hbm %s768_s4, 16 }
  0x1a   : > { %v266_v16 = vld [vmem:[%s251_s5] sm:$0xff]  ;;  %s325_s5 = sshll.u32 %s247_s30, 4  ;;  %p525_p12 = scmp.ne.s32.totalorder %s523_s14, %s524_s7  ;;  %s326_s5 = int_to_ptr.vmem [resolvable:$true] %s325_s5 }
  0x1b   : > { %290 = vmatpush.msra.mxu0 %v279_v3  ;;  %v507_v17 = vld [vmem:[%s766_s2] ss:$0 sm:$0xff]  ;;  %p529_p1 = scmp.lt.s32.totalorder %s523_s14, %s768_s4  ;;  %p530_p2 = scmp.lt.s32.totalorder %s528_s9, %s524_s7 }
  0x1c   : > { %v307_v18 = vld [vmem:[%s265_s13] sm:$0xff]  ;;  %p526_p13 = pnand %p525_p12, %p653_p4 }
  0x1d   : > { %291 = vmatpush.msra.mxu0 %v278_v4  ;;  %p531_p3 = por %p530_p2, %p529_p1 }
  0x1e   : > { %p527_p0 = pneg %p526_p13 }
  0x1f   : > { %292 = vmatpush.msra.mxu0 %v277_v5 }
  0x20   : > { %p532_p5 = pnand %p531_p3, %p527_p0 }
  0x21   : > { %293 = vmatpush.msra.mxu0 %v276_v6 }
  0x23   : > { %294 = vmatpush.msra.mxu0 %v275_v7 }
  0x25   : > { %295 = vmatpush.msra.mxu0 %v274_v8 }
  0x27   : > { %296 = vmatpush.msra.mxu0 %v273_v9 }
  0x29   : > { %297 = vmatpush.msra.mxu0 %v272_v10 }
  0x2b   : > { %298 = vmatpush.msra.mxu0 %v271_v11 }
  0x2d   : > { %299 = vmatpush.msra.mxu0 %v270_v12 }
  0x2f   : > { %300 = vmatpush.msra.mxu0 %v269_v13 }
  0x31   : > { %301 = vmatpush.msra.mxu0 %v268_v14 }
  0x33   : > { %302 = vmatpush.msra.mxu0 %v267_v15 }
  0x34   : > { %303 = vmatmul.f32.vlgmr.msra.gmra.mxu0 %v266_v16 }
  0xb1   : > { %v304_v19 = vpop.f32.mrf.mxu0 }
  0xb2   : > { %v305_v20 = vadd.f32 %v507_v17, %v304_v19 }
  0xb4   : > { %v308_v21 = vadd.f32 %v307_v18, %v305_v20 }
  0xb6   : > { %310 = vst.msk [vmem:[%s247_s30] sm:$0xff] %vm309_vm0, %v308_v21 }
  0xb7   : > { %535 = shalt.err (!%p532_p5)
}
  0xb8   : > { %452 = dma.vmem_to_hbm [thread:$0]  (%p653_p4), %s326_s5, 128, %s328_s6, %s312_s18  }
  0xb9 PF: > { %p458_p6 = scmp.ge.s32.totalorder %s586_s20, 2  ;;  %s339_s8 = sand.u32 1, %s566_s15  }
  0xba   : > { %s340_s21 = scalar_lea.sflag [#allocation3], %s339_s8 }
  0xbb   : > { %p455_p7 = pnand %p458_p6, %p660_p8 }
  0xbd   : > { %p456_p9 = pneg %p455_p7 }
  0xbf   : > { %561 = dma.done.wait (%p456_p9), %s340_s21, 128  }
  0xc0   : > { %563 = vsyncadd (%p456_p9), %s340_s21, 4294967168  ;;  %s17_s20 = sadd.s32 1, %s586_s20   ;;  %s771_s15 = smov %s570_s16 }
  0xc1   : > { %p14_p10 = scmp.ge.s32.totalorder %s17_s20, 4   ;;  %s772_s16 = smov %s574_s17 }
  0xc2   : > { %s773_s17 = smov %s666_s28  ;;  %s774_s18 = smov %s582_s19 }
  0xc3   : > { %s775_s19 = smov %s777_s23  ;;  %16 = sbr.rel (!%p14_p10) target bundleno = 4 (0x4), region = 80 }
  0xc8   :  { %346 = vsyncpa [#allocation3], 1 }
  0xc9   :  { %348 = vsyncpa [#allocation3 + $0x1], 1 }

</bundles_post_ra>
